<compile_context>
chip_gen: v5e
topology: v5e:2x2
jax: 0.10.0
libtpu: 0.0.40
codegen_flags: <defaults>
</compile_context>

<pallas_src>
import functools

import jax
import jax.numpy as jnp
from jax import lax
from jax.experimental import pallas as pl
from jax.experimental.pallas import tpu as pltpu

LANE = 128     # TPU lane width; hidden/output feature dims are padded to this
TILE_B = 128   # batch rows per grid step


def _snake_kernel(x_ref, w1_ref, b1_ref, w2_ref, b2_ref, w3_ref, b3_ref,
                  out_ref, *, output_size):
    x = x_ref[...].astype(jnp.float32)                                   # (TB, I)

    h1 = jnp.tanh(
        jnp.dot(x, w1_ref[...], preferred_element_type=jnp.float32)
        + b1_ref[...])                                                   # (TB, 128)
    h2 = jnp.tanh(
        jnp.dot(h1, w2_ref[...], preferred_element_type=jnp.float32)
        + b2_ref[...])                                                   # (TB, 128)
    z3 = (jnp.dot(h2, w3_ref[...], preferred_element_type=jnp.float32)
          + b3_ref[...])                                                 # (TB, 128)
    # tanh + sigmoid skipped: strictly monotonic, argmax unchanged.

    # Per-row argmax over the real output lanes; padded lanes masked to -inf.
    col = lax.broadcasted_iota(jnp.int32, z3.shape, 1)
    masked = jnp.where(col < output_size, z3, -jnp.inf)
    m = jnp.max(masked, axis=-1, keepdims=True)
    # First-occurrence tie-break, like torch.argmax.
    arg = jnp.min(jnp.where(masked == m, col, jnp.int32(z3.shape[1])),
                  axis=-1, keepdims=True)                                # (TB, 1)

    out_ref[...] = arg.astype(jnp.int32)                                 # (TB, 1)


@functools.partial(jax.jit, static_argnames=("output_size",))
def snake_player_forward(x, padded_params, *, output_size):
    """x: (B, input_size) f32; padded_params: 128-lane-padded weights.

    Returns a device int32 vector of shape (B,) with one action per row.
    (No host sync here -- consume on-device or block once at the end.)
    """
    B, input_size = x.shape
    Bp = ((B + TILE_B - 1) // TILE_B) * TILE_B
    if Bp != B:
        x = jnp.pad(x, ((0, Bp - B), (0, 0)))

    w1, b1 = padded_params["w1"], padded_params["b1"]
    w2, b2 = padded_params["w2"], padded_params["b2"]
    w3, b3 = padded_params["w3"], padded_params["b3"]

    call = pl.pallas_call(
        functools.partial(_snake_kernel, output_size=output_size),
        out_shape=jax.ShapeDtypeStruct((Bp, 1), jnp.int32),
        grid_spec=pltpu.PrefetchScalarGridSpec(
            num_scalar_prefetch=0,
            grid=(Bp // TILE_B,),
            in_specs=[
                # Activations: one batch tile per grid step.
                pl.BlockSpec((TILE_B, input_size), lambda i: (i, 0)),
                # Weights/biases: full arrays, VMEM-resident across grid steps.
                pl.BlockSpec((input_size, LANE), lambda i: (0, 0)),
                pl.BlockSpec((1, LANE), lambda i: (0, 0)),
                pl.BlockSpec((LANE, LANE), lambda i: (0, 0)),
                pl.BlockSpec((1, LANE), lambda i: (0, 0)),
                pl.BlockSpec((LANE, LANE), lambda i: (0, 0)),
                pl.BlockSpec((1, LANE), lambda i: (0, 0)),
            ],
            # (TILE_B, 1) output column: last block dim equals the full array
            # dim (1), so it tiles legally; HBM writeback is 512 B per tile.
            out_specs=pl.BlockSpec((TILE_B, 1), lambda i: (i, 0)),
        ),
        compiler_params=pltpu.CompilerParams(
            dimension_semantics=("parallel",)),
    )
    out = call(x, w1, b1, w2, b2, w3, b3)
    return out[:B, 0]


def init_params(key, input_size, hidden_size, output_size):
    """nn.Linear-style init: U(-1/sqrt(fan_in), 1/sqrt(fan_in)).

    Weights stored transposed as (in_features, out_features), unpadded."""
    def linear(k, fan_in, fan_out):
        kw, kb = jax.random.split(k)
        bound = 1.0 / jnp.sqrt(jnp.float32(fan_in))
        w = jax.random.uniform(kw, (fan_in, fan_out), jnp.float32,
                               minval=-bound, maxval=bound)
        b = jax.random.uniform(kb, (1, fan_out), jnp.float32,
                               minval=-bound, maxval=bound)
        return w, b

    k1, k2, k3 = jax.random.split(key, 3)
    w1, b1 = linear(k1, input_size, hidden_size)
    w2, b2 = linear(k2, hidden_size, hidden_size)
    w3, b3 = linear(k3, hidden_size, output_size)
    return dict(w1=w1, b1=b1, w2=w2, b2=b2, w3=w3, b3=b3)


def pad_params(params):
    """Zero-pad hidden/output feature dims to LANE (lane-dense layout).

    Zero padding is exact: padded hidden units stay 0 through tanh and
    contribute nothing downstream; padded output lanes are masked in-kernel."""
    def pad_to(a, rows, cols):
        out = jnp.zeros((rows, cols), a.dtype)
        return out.at[:a.shape[0], :a.shape[1]].set(a)

    in_dim = params["w1"].shape[0]
    return dict(
        w1=pad_to(params["w1"], in_dim, LANE),
        b1=pad_to(params["b1"], 1, LANE),
        w2=pad_to(params["w2"], LANE, LANE),
        b2=pad_to(params["b2"], 1, LANE),
        w3=pad_to(params["w3"], LANE, LANE),
        b3=pad_to(params["b3"], 1, LANE),
    )


if __name__ == "__main__":
    input_size, hidden_size, output_size = 32, 32, 4
    population = 256  # whole GA population batched into one kernel call

    key = jax.random.PRNGKey(0)
    kx, kp = jax.random.split(key)
    x = jax.random.normal(kx, (population, input_size), jnp.float32)
    params = init_params(kp, input_size, hidden_size, output_size)
    padded = pad_params(params)

    actions = snake_player_forward(x, padded, output_size=output_size)
    actions = jax.block_until_ready(actions)  # single host sync, at the end

    # Pure-JAX reference of the original (unpadded) module.
    def ref_scores(x, p):
        h = jnp.tanh(x @ p["w1"] + p["b1"])
        h = jnp.tanh(h @ p["w2"] + p["b2"])
        h = jnp.tanh(h @ p["w3"] + p["b3"])
        return jax.nn.sigmoid(h)

    s_ref = ref_scores(x, params)
    ref_actions = jnp.argmax(s_ref, axis=-1).astype(jnp.int32)

    assert actions.shape == (population,)
    assert bool(jnp.all((actions >= 0) & (actions < output_size)))
    # The kernel must pick the (numerically) maximal score per row; allow
    # ulp-level ties between the two matmul paths.
    picked = jnp.take_along_axis(s_ref, actions[:, None], axis=-1)[:, 0]
    best = jnp.max(s_ref, axis=-1)
    exact = actions == ref_actions
    assert bool(jnp.all(exact | (best - picked <= 1e-6))), (actions, ref_actions)

    print("KERNEL_OK")
</pallas_src>

<mosaic_0001>
module attributes {stable_mosaic.version = 11 : i64} {
  func.func @_snake_kernel(%arg0: i32, %arg1: memref<128x32xf32, #tpu.memory_space<vmem>>, %arg2: memref<32x128xf32, #tpu.memory_space<vmem>>, %arg3: memref<1x128xf32, #tpu.memory_space<vmem>>, %arg4: memref<128x128xf32, #tpu.memory_space<vmem>>, %arg5: memref<1x128xf32, #tpu.memory_space<vmem>>, %arg6: memref<128x128xf32, #tpu.memory_space<vmem>>, %arg7: memref<1x128xf32, #tpu.memory_space<vmem>>, %arg8: memref<128x1xi32, #tpu.memory_space<vmem>>) attributes {dimension_semantics = [#tpu.dimension_semantics<parallel>], iteration_bounds = array<i64: 2>, scalar_prefetch = 0 : i64, scratch_operands = 0 : i64, tpu.core_type = #tpu.core_type<tc>, window_params = [{transform_indices = @transform_0, window_bounds = array<i64: 128, 32>}, {pipeline_mode = #tpu.pipeline_mode<synchronous>, transform_indices = @transform_1, window_bounds = array<i64: 32, 128>}, {pipeline_mode = #tpu.pipeline_mode<synchronous>, transform_indices = @transform_2, window_bounds = array<i64: 1, 128>}, {pipeline_mode = #tpu.pipeline_mode<synchronous>, transform_indices = @transform_3, window_bounds = array<i64: 128, 128>}, {pipeline_mode = #tpu.pipeline_mode<synchronous>, transform_indices = @transform_4, window_bounds = array<i64: 1, 128>}, {pipeline_mode = #tpu.pipeline_mode<synchronous>, transform_indices = @transform_5, window_bounds = array<i64: 128, 128>}, {pipeline_mode = #tpu.pipeline_mode<synchronous>, transform_indices = @transform_6, window_bounds = array<i64: 1, 128>}, {transform_indices = @transform_7, window_bounds = array<i64: 128, 1>}]} {
    %c0 = arith.constant 0 : index
    %c0_0 = arith.constant 0 : index
    %0 = vector.load %arg1[%c0, %c0_0] : memref<128x32xf32, #tpu.memory_space<vmem>>, vector<128x32xf32>
    %c0_1 = arith.constant 0 : index
    %c0_2 = arith.constant 0 : index
    %1 = vector.load %arg2[%c0_1, %c0_2] : memref<32x128xf32, #tpu.memory_space<vmem>>, vector<32x128xf32>
    %cst = arith.constant dense<0.000000e+00> : vector<128x128xf32>
    %2 = tpu.matmul %0, %1, %cst {dimension_numbers = #tpu.dot_dimension_numbers<[1], [0], [0], [1], [0, 0, 1, 1], [], []>} : vector<128x32xf32>, vector<32x128xf32>, vector<128x128xf32> -> vector<128x128xf32>
    %c0_3 = arith.constant 0 : index
    %c0_4 = arith.constant 0 : index
    %3 = vector.load %arg3[%c0_3, %c0_4] : memref<1x128xf32, #tpu.memory_space<vmem>>, vector<1x128xf32>
    %4 = vector.broadcast %3 : vector<1x128xf32> to vector<128x128xf32>
    %5 = arith.addf %2, %4 : vector<128x128xf32>
    %6 = math.tanh %5 : vector<128x128xf32>
    %c0_5 = arith.constant 0 : index
    %c0_6 = arith.constant 0 : index
    %7 = vector.load %arg4[%c0_5, %c0_6] : memref<128x128xf32, #tpu.memory_space<vmem>>, vector<128x128xf32>
    %cst_7 = arith.constant dense<0.000000e+00> : vector<128x128xf32>
    %8 = tpu.matmul %6, %7, %cst_7 {dimension_numbers = #tpu.dot_dimension_numbers<[1], [0], [0], [1], [0, 0, 1, 1], [], []>} : vector<128x128xf32>, vector<128x128xf32>, vector<128x128xf32> -> vector<128x128xf32>
    %c0_8 = arith.constant 0 : index
    %c0_9 = arith.constant 0 : index
    %9 = vector.load %arg5[%c0_8, %c0_9] : memref<1x128xf32, #tpu.memory_space<vmem>>, vector<1x128xf32>
    %10 = vector.broadcast %9 : vector<1x128xf32> to vector<128x128xf32>
    %11 = arith.addf %8, %10 : vector<128x128xf32>
    %12 = math.tanh %11 : vector<128x128xf32>
    %c0_10 = arith.constant 0 : index
    %c0_11 = arith.constant 0 : index
    %13 = vector.load %arg6[%c0_10, %c0_11] : memref<128x128xf32, #tpu.memory_space<vmem>>, vector<128x128xf32>
    %cst_12 = arith.constant dense<0.000000e+00> : vector<128x128xf32>
    %14 = tpu.matmul %12, %13, %cst_12 {dimension_numbers = #tpu.dot_dimension_numbers<[1], [0], [0], [1], [0, 0, 1, 1], [], []>} : vector<128x128xf32>, vector<128x128xf32>, vector<128x128xf32> -> vector<128x128xf32>
    %c0_13 = arith.constant 0 : index
    %c0_14 = arith.constant 0 : index
    %15 = vector.load %arg7[%c0_13, %c0_14] : memref<1x128xf32, #tpu.memory_space<vmem>>, vector<1x128xf32>
    %16 = vector.broadcast %15 : vector<1x128xf32> to vector<128x128xf32>
    %17 = arith.addf %14, %16 : vector<128x128xf32>
    %18 = tpu.iota {dimensions = array<i32: 1>} : vector<128x128xi32>
    %c4_i32 = arith.constant 4 : i32
    %19 = vector.broadcast %c4_i32 : i32 to vector<128x128xi32>
    %20 = arith.cmpi slt, %18, %19 : vector<128x128xi32>
    %cst_15 = arith.constant 0xFF800000 : f32
    %21 = vector.broadcast %cst_15 : f32 to vector<128x128xf32>
    %22 = arith.select %20, %17, %21 : vector<128x128xi1>, vector<128x128xf32>
    %cst_16 = arith.constant dense<0xFF800000> : vector<128xf32>
    %23 = vector.multi_reduction <maximumf>, %22, %cst_16 [1] : vector<128x128xf32> to vector<128xf32>
    %24 = vector.shape_cast %23 : vector<128xf32> to vector<128x1xf32>
    %25 = vector.broadcast %24 : vector<128x1xf32> to vector<128x128xf32>
    %26 = arith.cmpf oeq, %22, %25 : vector<128x128xf32>
    %c128_i32 = arith.constant 128 : i32
    %27 = vector.broadcast %c128_i32 : i32 to vector<128x128xi32>
    %28 = arith.select %26, %18, %27 : vector<128x128xi1>, vector<128x128xi32>
    %cst_17 = arith.constant dense<2147483647> : vector<128xi32>
    %29 = vector.multi_reduction <minsi>, %28, %cst_17 [1] : vector<128x128xi32> to vector<128xi32>
    %30 = vector.shape_cast %29 : vector<128xi32> to vector<128x1xi32>
    %c0_18 = arith.constant 0 : index
    %c0_19 = arith.constant 0 : index
    %31 = vector.load %arg8[%c0_18, %c0_19] : memref<128x1xi32, #tpu.memory_space<vmem>>, vector<128x1xi32>
    tpu.vector_store %arg8[%c0_18, %c0_19], %30 {strides = array<i32>} : memref<128x1xi32, #tpu.memory_space<vmem>>, vector<128x1xi32>,
    return
  }
  func.func @transform_0(%arg0: i32) -> (i32, i32) {
    %c0_i32 = arith.constant 0 : i32
    %c0_i32_0 = arith.constant 0 : i32
    return %arg0, %c0_i32 : i32, i32
  }
  func.func @transform_1(%arg0: i32) -> (i32, i32) {
    %c0_i32 = arith.constant 0 : i32
    %c0_i32_0 = arith.constant 0 : i32
    %c0_i32_1 = arith.constant 0 : i32
    return %c0_i32, %c0_i32_0 : i32, i32
  }
  func.func @transform_2(%arg0: i32) -> (i32, i32) {
    %c0_i32 = arith.constant 0 : i32
    %c0_i32_0 = arith.constant 0 : i32
    %c0_i32_1 = arith.constant 0 : i32
    return %c0_i32, %c0_i32_0 : i32, i32
  }
  func.func @transform_3(%arg0: i32) -> (i32, i32) {
    %c0_i32 = arith.constant 0 : i32
    %c0_i32_0 = arith.constant 0 : i32
    %c0_i32_1 = arith.constant 0 : i32
    return %c0_i32, %c0_i32_0 : i32, i32
  }
  func.func @transform_4(%arg0: i32) -> (i32, i32) {
    %c0_i32 = arith.constant 0 : i32
    %c0_i32_0 = arith.constant 0 : i32
    %c0_i32_1 = arith.constant 0 : i32
    return %c0_i32, %c0_i32_0 : i32, i32
  }
  func.func @transform_5(%arg0: i32) -> (i32, i32) {
    %c0_i32 = arith.constant 0 : i32
    %c0_i32_0 = arith.constant 0 : i32
    %c0_i32_1 = arith.constant 0 : i32
    return %c0_i32, %c0_i32_0 : i32, i32
  }
  func.func @transform_6(%arg0: i32) -> (i32, i32) {
    %c0_i32 = arith.constant 0 : i32
    %c0_i32_0 = arith.constant 0 : i32
    %c0_i32_1 = arith.constant 0 : i32
    return %c0_i32, %c0_i32_0 : i32, i32
  }
  func.func @transform_7(%arg0: i32) -> (i32, i32) {
    %c0_i32 = arith.constant 0 : i32
    %c0_i32_0 = arith.constant 0 : i32
    return %arg0, %c0_i32 : i32, i32
  }
}

</mosaic_0001>

<bundles_post_ra>
// kernel: snake_player_forward.1
= control target key start
LH: loop header
LB: loop body
LE: loop exit
PB: predicated region body
PF: predicated region fallthrough
CT: control target
= control target key end

     0   :  { %s1184_s24 = smov 0   ;;  %s1750_s0 = inlined_call_operand.vmem [shape: f32[256,32], index: 0, kind: input, shape index: {}]   ;;  %s1751_s1 = inlined_call_operand.vmem [shape: f32[32,128], index: 1, kind: input, shape index: {}]   ;;  %s1752_s2 = inlined_call_operand.vmem [shape: f32[1,128], index: 2, kind: input, shape index: {}]   ;;  %s1753_s3 = inlined_call_operand.vmem [shape: f32[128,128], index: 3, kind: input, shape index: {}]   ;;  %s1754_s4 = inlined_call_operand.vmem [shape: f32[1,128], index: 4, kind: input, shape index: {}]   ;;  %s1755_s5 = inlined_call_operand.vmem [shape: f32[128,128], index: 5, kind: input, shape index: {}]   ;;  %s1756_s6 = inlined_call_operand.vmem [shape: f32[1,128], index: 6, kind: input, shape index: {}]   ;;  %s1757_s7 = inlined_call_operand.vmem [shape: s32[256,1], index: 7, kind: output, shape index: {}]  }
   0x1 LB: > { %s1002_s25 = sadd.s32 4294967295, %s1142_s24   ;;  %p1006_p0 = scmp.ge.s32.totalorder %s1142_s24, 1  ;;  %s1142_s24 = sphi %s1184_s24, %s17_s24  }
   0x2   : > { %p238_p1 = scmp.lt.s32.totalorder %s1142_s24, 3 }
   0x4   : > { %p239_p2 = pnand %p1006_p0, %p238_p1 }
   0x5   : > { %s1007_s30 = sshll.u32 (!%p239_p2), %s1002_s25, 4 }
   0x6   : > { %242 = sbr.rel (%p239_p2) target bundleno = 912 (0x390), region = 48  ;;  %p271_p3 = scmp.lt.s32.totalorder (!%p239_p2), %s1007_s30, 31 }
   0xb   : > { %v301_v0 = vld [vmem:[%s1751_s1 + $0x18] sm:$0xff]  ;;  %v300_v1 = vld [vmem:[%s1751_s1 + $0x10] sm:$0xff]  ;;  %v299_v2 = vld [vmem:[%s1751_s1 + $0x8] sm:$0xff]  ;;  %s1759_s30 = smov (!%p271_p3, %s1007_s30), 31  ;;  %vm306_vm0 = vcmask 261120  }
   0xc   : > { %367 = vmatpush.msra.mxu0 %v301_v0  ;;  %v298_v3 = vld [vmem:[%s1751_s1] sm:$0xff]  ;;  %s1008_s12 = sshll.u32 %s1759_s30, 3  ;;  %v451_v14 = vld [vmem:[%s1753_s3 + $0x78] sm:$0xff]  ;;  %v450_v15 = vld [vmem:[%s1753_s3 + $0x70] sm:$0xff] }
   0xd   : > { %s1212_s15 = scalar_lea.vmem %s1750_s0, %s1008_s12  ;;  %456 = vmatpush.msra.mxu1 %v451_v14  ;;  %v449_v16 = vld [vmem:[%s1753_s3 + $0x68] sm:$0xff]  ;;  %1029 = vmatpush.msra.mxu3 %v451_v14  ;;  %v448_v17 = vld [vmem:[%s1753_s3 + $0x60] sm:$0xff]  ;;  %v447_v19 = vld [vmem:[%s1753_s3 + $0x58] sm:$0xff]  ;;  %s1688_s8 = scalar_lea.vmem %s1757_s7, %s1008_s12 }
   0xe   : > { %368 = vmatpush.msra.mxu0 %v300_v1  ;;  %v282_v4 = vld [vmem:[%s1212_s15] sm:$0xff]  ;;  %v283_v5 = vld [vmem:[%s1212_s15 + $0x8] sm:$0xff]  ;;  %v284_v6 = vld [vmem:[%s1212_s15 + $0x10] sm:$0xff] }
   0xf   : > { %v285_v7 = vld [vmem:[%s1212_s15 + $0x18] sm:$0xff]  ;;  %v286_v8 = vld [vmem:[%s1212_s15 + $0x20] sm:$0xff]  ;;  %v287_v9 = vld [vmem:[%s1212_s15 + $0x28] sm:$0xff]  ;;  %457 = vmatpush.msra.mxu1 %v450_v15  ;;  %1030 = vmatpush.msra.mxu3 %v450_v15 }
  0x10   : > { %369 = vmatpush.msra.mxu0 %v299_v2  ;;  %v288_v10 = vld [vmem:[%s1212_s15 + $0x30] sm:$0xff]  ;;  %v289_v11 = vld [vmem:[%s1212_s15 + $0x38] sm:$0xff]  ;;  %v290_v12 = vld [vmem:[%s1212_s15 + $0x40] sm:$0xff] }
  0x11   : > { %v291_v13 = vld [vmem:[%s1212_s15 + $0x48] sm:$0xff]  ;;  %458 = vmatpush.msra.mxu1 %v449_v16  ;;  %v292_v18 = vld [vmem:[%s1212_s15 + $0x50] sm:$0xff]  ;;  %1031 = vmatpush.msra.mxu3 %v449_v16  ;;  %v444_v22 = vld [vmem:[%s1753_s3 + $0x40] sm:$0xff] }
  0x12   : > { %370 = vmatpush.msra.mxu0 %v298_v3  ;;  %v446_v20 = vld [vmem:[%s1753_s3 + $0x50] sm:$0xff]  ;;  %v445_v21 = vld [vmem:[%s1753_s3 + $0x48] sm:$0xff]  ;;  %v293_v23 = vld [vmem:[%s1212_s15 + $0x58] sm:$0xff] }
  0x13   : > { %1011 = vmatmul.msk.f32.vlgmr.msra.gmra.mxu0 %vm306_vm0, %v282_v4  ;;  %459 = vmatpush.msra.mxu1 %v448_v17  ;;  %v443_v24 = vld [vmem:[%s1753_s3 + $0x38] sm:$0xff]  ;;  %v442_v25 = vld [vmem:[%s1753_s3 + $0x30] sm:$0xff]  ;;  %v441_v26 = vld [vmem:[%s1753_s3 + $0x28] sm:$0xff] }
  0x14   : > { %1032 = vmatpush.msra.mxu3 %v448_v17  ;;  %v294_v27 = vld [vmem:[%s1212_s15 + $0x60] sm:$0xff]  ;;  %v439_v29 = vld [vmem:[%s1753_s3 + $0x18] sm:$0xff]  ;;  %v438_v30 = vld [vmem:[%s1753_s3 + $0x10] sm:$0xff] }
  0x15   : > { %460 = vmatpush.msra.mxu1 %v447_v19  ;;  %v440_v28 = vld [vmem:[%s1753_s3 + $0x20] sm:$0xff]  ;;  %v437_v31 = vld [vmem:[%s1753_s3 + $0x8] sm:$0xff]  ;;  %v296_v34 = vld [vmem:[%s1212_s15 + $0x70] sm:$0xff] }
  0x16   : > { %1033 = vmatpush.msra.mxu3 %v447_v19  ;;  %v295_v32 = vld [vmem:[%s1212_s15 + $0x68] sm:$0xff]  ;;  %v436_v33 = vld [vmem:[%s1753_s3] sm:$0xff]  ;;  %v297_v35 = vld [vmem:[%s1212_s15 + $0x78] sm:$0xff] }
  0x17   : > { %461 = vmatpush.msra.mxu1 %v446_v20  ;;  %v1297_v36 = vld [vmem:[%s1752_s2] ss:$0 sm:$0xff]  ;;  %v546_v14 = vld [vmem:[%s1755_s5 + $0x48] sm:$0xff]  ;;  %v544_v19 = vld [vmem:[%s1755_s5 + $0x38] sm:$0xff] }
  0x18   : > { %1034 = vmatpush.msra.mxu3 %v446_v20  ;;  %v545_v15 = vld [vmem:[%s1755_s5 + $0x40] sm:$0xff]  ;;  %v543_v20 = vld [vmem:[%s1755_s5 + $0x30] sm:$0xff] }
  0x19   : > { %462 = vmatpush.msra.mxu1 %v445_v21 }
  0x1a   : > { %1035 = vmatpush.msra.mxu3 %v445_v21  ;;  %v542_v21 = vld [vmem:[%s1755_s5 + $0x28] sm:$0xff] }
  0x1b   : > { %1012 = vmatmul.msk.f32.gmra.mxu0 %vm306_vm0, %v283_v5  ;;  %463 = vmatpush.msra.mxu1 %v444_v22  ;;  %v552_v5 = vld [vmem:[%s1755_s5 + $0x78] sm:$0xff] }
  0x1c   : > { %1036 = vmatpush.msra.mxu3 %v444_v22  ;;  %557 = vmatpush.msra.mxu2 %v552_v5  ;;  %v541_v22 = vld [vmem:[%s1755_s5 + $0x20] sm:$0xff] }
  0x1d   : > { %464 = vmatpush.msra.mxu1 %v443_v24 }
  0x1e   : > { %1037 = vmatpush.msra.mxu3 %v443_v24 }
  0x1f   : > { %465 = vmatpush.msra.mxu1 %v442_v25 }
  0x20   : > { %1038 = vmatpush.msra.mxu3 %v442_v25 }
  0x21   : > { %466 = vmatpush.msra.mxu1 %v441_v26 }
  0x22   : > { %1039 = vmatpush.msra.mxu3 %v441_v26  ;;  %v540_v26 = vld [vmem:[%s1755_s5 + $0x18] sm:$0xff] }
  0x23   : > { %1013 = vmatmul.msk.f32.gmra.mxu0 %vm306_vm0, %v284_v6  ;;  %467 = vmatpush.msra.mxu1 %v440_v28  ;;  %v551_v6 = vld [vmem:[%s1755_s5 + $0x70] sm:$0xff] }
  0x24   : > { %1040 = vmatpush.msra.mxu3 %v440_v28  ;;  %558 = vmatpush.msra.mxu2 %v551_v6  ;;  %v538_v28 = vld [vmem:[%s1755_s5 + $0x8] sm:$0xff] }
  0x25   : > { %468 = vmatpush.msra.mxu1 %v439_v29 }
  0x26   : > { %1041 = vmatpush.msra.mxu3 %v439_v29  ;;  %v537_v29 = vld [vmem:[%s1755_s5] sm:$0xff] }
  0x27   : > { %469 = vmatpush.msra.mxu1 %v438_v30 }
  0x28   : > { %1042 = vmatpush.msra.mxu3 %v438_v30 }
  0x29   : > { %470 = vmatpush.msra.mxu1 %v437_v31 }
  0x2a   : > { %1043 = vmatpush.msra.mxu3 %v437_v31 }
  0x2b   : > { %1014 = vmatmul.msk.f32.gmra.mxu0 %vm306_vm0, %v285_v7  ;;  %471 = vmatpush.msra.mxu1 %v436_v33  ;;  %v550_v7 = vld [vmem:[%s1755_s5 + $0x68] sm:$0xff] }
  0x2c   : > { %1044 = vmatpush.msra.mxu3 %v436_v33  ;;  %559 = vmatpush.msra.mxu2 %v550_v7 }
  0x2e   : > { %1045 = vmatpush.msrb.mxu3 %v552_v5 }
  0x30   : > { %1046 = vmatpush.msrb.mxu3 %v551_v6 }
  0x32   : > { %1047 = vmatpush.msrb.mxu3 %v550_v7 }
  0x33   : > { %1015 = vmatmul.msk.f32.gmra.mxu0 %vm306_vm0, %v286_v8  ;;  %v549_v8 = vld [vmem:[%s1755_s5 + $0x60] sm:$0xff] }
  0x34   : > { %560 = vmatpush.msra.mxu2 %v549_v8  ;;  %1048 = vmatpush.msrb.mxu3 %v549_v8 }
  0x3b   : > { %1016 = vmatmul.msk.f32.gmra.mxu0 %vm306_vm0, %v287_v9 }
  0x43   : > { %1017 = vmatmul.msk.f32.gmra.mxu0 %vm306_vm0, %v288_v10 }
  0x4b   : > { %1018 = vmatmul.msk.f32.gmra.mxu0 %vm306_vm0, %v289_v11 }
  0x53   : > { %1019 = vmatmul.msk.f32.gmra.mxu0 %vm306_vm0, %v290_v12  ;;  %v548_v12 = vld [vmem:[%s1755_s5 + $0x58] sm:$0xff] }
  0x54   : > { %561 = vmatpush.msra.mxu2 %v548_v12  ;;  %1049 = vmatpush.msrb.mxu3 %v548_v12 }
  0x5b   : > { %1020 = vmatmul.msk.f32.gmra.mxu0 %vm306_vm0, %v291_v13  ;;  %v547_v13 = vld [vmem:[%s1755_s5 + $0x50] sm:$0xff] }
  0x5c   : > { %562 = vmatpush.msra.mxu2 %v547_v13  ;;  %1050 = vmatpush.msrb.mxu3 %v547_v13 }
  0x5e   : > { %563 = vmatpush.msra.mxu2 %v546_v14  ;;  %1051 = vmatpush.msrb.mxu3 %v546_v14 }
  0x60   : > { %564 = vmatpush.msra.mxu2 %v545_v15  ;;  %1052 = vmatpush.msrb.mxu3 %v545_v15 }
  0x62   : > { %565 = vmatpush.msra.mxu2 %v544_v19  ;;  %1053 = vmatpush.msrb.mxu3 %v544_v19 }
  0x63   : > { %1021 = vmatmul.msk.f32.gmra.mxu0 %vm306_vm0, %v292_v18 }
  0x64   : > { %566 = vmatpush.msra.mxu2 %v543_v20  ;;  %1054 = vmatpush.msrb.mxu3 %v543_v20 }
  0x66   : > { %567 = vmatpush.msra.mxu2 %v542_v21  ;;  %1055 = vmatpush.msrb.mxu3 %v542_v21  ;;  %v622_v21 = vlaneseq }
  0x68   : > { %568 = vmatpush.msra.mxu2 %v541_v22  ;;  %1056 = vmatpush.msrb.mxu3 %v541_v22 }
  0x6a   : > { %569 = vmatpush.msra.mxu2 %v540_v26  ;;  %1057 = vmatpush.msrb.mxu3 %v540_v26 }
  0x6b   : > { %1022 = vmatmul.msk.f32.gmra.mxu0 %vm306_vm0, %v293_v23 }
  0x73   : > { %1023 = vmatmul.msk.f32.gmra.mxu0 %vm306_vm0, %v294_v27  ;;  %v539_v27 = vld [vmem:[%s1755_s5 + $0x10] sm:$0xff] }
  0x74   : > { %570 = vmatpush.msra.mxu2 %v539_v27  ;;  %1058 = vmatpush.msrb.mxu3 %v539_v27 }
  0x76   : > { %571 = vmatpush.msra.mxu2 %v538_v28  ;;  %1059 = vmatpush.msrb.mxu3 %v538_v28 }
  0x78   : > { %572 = vmatpush.msra.mxu2 %v537_v29  ;;  %1060 = vmatpush.msrb.mxu3 %v537_v29 }
  0x7b   : > { %1024 = vmatmul.msk.f32.gmra.mxu0 %vm306_vm0, %v295_v32 }
  0x83   : > { %1025 = vmatmul.msk.f32.gmra.mxu0 %vm306_vm0, %v296_v34 }
  0x8b   : > { %1026 = vmatmul.msk.f32.gmra.mxu0 %vm306_vm0, %v297_v35 }
  0x90   : > { %v372_v37 = vpop.f32.mrf.mxu0 }
  0x91   : > { %v373_v38 = vadd.f32 %v1297_v36, %v372_v37 }
  0x93   : > { %1072 = vtanh.f32 %v373_v38  ;;  %v1366_v38 = vld [vmem:[%s1754_s4] ss:$0 sm:$0xff] }
  0x98   : > { %v375_v39 = vpop.f32.mrf.mxu0 }
  0x99   : > { %v1073_v40 = vpop.eup %1072  ;;  %v376_v41 = vadd.f32 %v1297_v36, %v375_v39 }
  0x9a   : > { %472 = vmatmul.f32.vlgmr.msra.gmra.mxu1 %v1073_v40 }
  0x9b   : > { %1074 = vtanh.f32 %v376_v41 }
  0xa0   : > { %v378_v42 = vpop.f32.mrf.mxu0 }
  0xa1   : > { %v1075_v43 = vpop.eup %1074  ;;  %v379_v44 = vadd.f32 %v1297_v36, %v378_v42 }
  0xa2   : > { %475 = vmatmul.f32.gmra.mxu1 %v1075_v43 }
  0xa3   : > { %1076 = vtanh.f32 %v379_v44 }
  0xa8   : > { %v381_v45 = vpop.f32.mrf.mxu0 }
  0xa9   : > { %v1077_v46 = vpop.eup %1076  ;;  %v382_v47 = vadd.f32 %v1297_v36, %v381_v45 }
  0xaa   : > { %478 = vmatmul.f32.gmra.mxu1 %v1077_v46 }
  0xab   : > { %1078 = vtanh.f32 %v382_v47 }
  0xb0   : > { %v384_v48 = vpop.f32.mrf.mxu0 }
  0xb1   : > { %v1079_v49 = vpop.eup %1078  ;;  %v385_v50 = vadd.f32 %v1297_v36, %v384_v48 }
  0xb2   : > { %481 = vmatmul.f32.gmra.mxu1 %v1079_v49 }
  0xb3   : > { %1080 = vtanh.f32 %v385_v50 }
  0xb8   : > { %v387_v51 = vpop.f32.mrf.mxu0 }
  0xb9   : > { %v1081_v52 = vpop.eup %1080  ;;  %v388_v53 = vadd.f32 %v1297_v36, %v387_v51 }
  0xba   : > { %484 = vmatmul.f32.gmra.mxu1 %v1081_v52 }
  0xbb   : > { %1082 = vtanh.f32 %v388_v53 }
  0xc0   : > { %v390_v54 = vpop.f32.mrf.mxu0 }
  0xc1   : > { %v1083_v55 = vpop.eup %1082  ;;  %v391_v56 = vadd.f32 %v1297_v36, %v390_v54 }
  0xc2   : > { %487 = vmatmul.f32.gmra.mxu1 %v1083_v55 }
  0xc3   : > { %1084 = vtanh.f32 %v391_v56 }
  0xc8   : > { %v393_v57 = vpop.f32.mrf.mxu0 }
  0xc9   : > { %v1085_v58 = vpop.eup %1084  ;;  %v394_v59 = vadd.f32 %v1297_v36, %v393_v57 }
  0xca   : > { %490 = vmatmul.f32.gmra.mxu1 %v1085_v58 }
  0xcb   : > { %1086 = vtanh.f32 %v394_v59 }
  0xd0   : > { %v396_v60 = vpop.f32.mrf.mxu0 }
  0xd1   : > { %v1087_v61 = vpop.eup %1086  ;;  %v397_v62 = vadd.f32 %v1297_v36, %v396_v60 }
  0xd2   : > { %493 = vmatmul.f32.gmra.mxu1 %v1087_v61 }
  0xd3   : > { %1088 = vtanh.f32 %v397_v62 }
  0xd8   : > { %v399_v63 = vpop.f32.mrf.mxu0 }
  0xd9   : > { %v1089_v0 = vpop.eup %1088  ;;  %v400_v1 = vadd.f32 %v1297_v36, %v399_v63 }
  0xda   : > { %496 = vmatmul.f32.gmra.mxu1 %v1089_v0 }
  0xdb   : > { %1090 = vtanh.f32 %v400_v1 }
  0xe0   : > { %v402_v2 = vpop.f32.mrf.mxu0 }
  0xe1   : > { %v1091_v3 = vpop.eup %1090  ;;  %v403_v4 = vadd.f32 %v1297_v36, %v402_v2 }
  0xe2   : > { %499 = vmatmul.f32.gmra.mxu1 %v1091_v3 }
  0xe3   : > { %1092 = vtanh.f32 %v403_v4 }
  0xe8   : > { %v405_v9 = vpop.f32.mrf.mxu0 }
  0xe9   : > { %v1093_v10 = vpop.eup %1092  ;;  %v406_v11 = vadd.f32 %v1297_v36, %v405_v9 }
  0xea   : > { %502 = vmatmul.f32.gmra.mxu1 %v1093_v10 }
  0xeb   : > { %1094 = vtanh.f32 %v406_v11 }
  0xf0   : > { %v408_v16 = vpop.f32.mrf.mxu0 }
  0xf1   : > { %v1095_v17 = vpop.eup %1094  ;;  %v409_v18 = vadd.f32 %v1297_v36, %v408_v16 }
  0xf2   : > { %505 = vmatmul.f32.gmra.mxu1 %v1095_v17 }
  0xf3   : > { %1096 = vtanh.f32 %v409_v18 }
  0xf8   : > { %v411_v23 = vpop.f32.mrf.mxu0 }
  0xf9   : > { %v1097_v24 = vpop.eup %1096  ;;  %v412_v25 = vadd.f32 %v1297_v36, %v411_v23  ;;  %v1384_v23 = vand.u32 127, %v622_v21 }
  0xfa   : > { %508 = vmatmul.f32.vlgmr.msra.gmra.mxu3 %v1097_v24  ;;  %v1389_v24 = vld [vmem:[%s1756_s6] ss:$0 sm:$0xff] }
  0xfb   : > { %1098 = vtanh.f32 %v412_v25  ;;  %vm624_vm1 = vcmp.lt.s32.totalorder %v1384_v23, 4 }
 0x100   : > { %v414_v30 = vpop.f32.mrf.mxu0 }
 0x101   : > { %v1099_v31 = vpop.eup %1098  ;;  %v415_v32 = vadd.f32 %v1297_v36, %v414_v30 }
 0x102   : > { %511 = vmatmul.f32.gmra.mxu3 %v1099_v31 }
 0x103   : > { %1100 = vtanh.f32 %v415_v32 }
 0x108   : > { %v417_v33 = vpop.f32.mrf.mxu0 }
 0x109   : > { %v1101_v34 = vpop.eup %1100  ;;  %v418_v35 = vadd.f32 %v1297_v36, %v417_v33 }
 0x10a   : > { %514 = vmatmul.f32.gmra.mxu3 %v1101_v34 }
 0x10b   : > { %1102 = vtanh.f32 %v418_v35 }
 0x111   : > { %v1103_v37 = vpop.eup %1102 }
 0x112   : > { %517 = vmatmul.f32.gmra.mxu3 %v1103_v37 }
 0x117   : > { %v473_v39 = vpop.f32.mrf.mxu1 }
 0x118   : > { %v474_v40 = vadd.f32 %v1366_v38, %v473_v39 }
 0x11a   : > { %1104 = vtanh.f32 %v474_v40 }
 0x11f   : > { %v476_v41 = vpop.f32.mrf.mxu1 }
 0x120   : > { %v1105_v42 = vpop.eup %1104  ;;  %v477_v43 = vadd.f32 %v1366_v38, %v476_v41 }
 0x121   : > { %573 = vmatmul.f32.vlgmr.msra.gmra.mxu2 %v1105_v42 }
 0x122   : > { %1106 = vtanh.f32 %v477_v43 }
 0x127   : > { %v479_v36 = vpop.f32.mrf.mxu1 }
 0x128   : > { %v1107_v44 = vpop.eup %1106  ;;  %v480_v45 = vadd.f32 %v1366_v38, %v479_v36 }
 0x129   : > { %576 = vmatmul.f32.gmra.mxu2 %v1107_v44 }
 0x12a   : > { %1108 = vtanh.f32 %v480_v45 }
 0x12f   : > { %v482_v46 = vpop.f32.mrf.mxu1 }
 0x130   : > { %v1109_v47 = vpop.eup %1108  ;;  %v483_v48 = vadd.f32 %v1366_v38, %v482_v46 }
 0x131   : > { %579 = vmatmul.f32.gmra.mxu2 %v1109_v47 }
 0x132   : > { %1110 = vtanh.f32 %v483_v48 }
 0x137   : > { %v485_v49 = vpop.f32.mrf.mxu1 }
 0x138   : > { %v1111_v50 = vpop.eup %1110  ;;  %v486_v51 = vadd.f32 %v1366_v38, %v485_v49 }
 0x139   : > { %582 = vmatmul.f32.gmra.mxu2 %v1111_v50 }
 0x13a   : > { %1112 = vtanh.f32 %v486_v51 }
 0x13f   : > { %v488_v52 = vpop.f32.mrf.mxu1 }
 0x140   : > { %v1113_v53 = vpop.eup %1112  ;;  %v489_v54 = vadd.f32 %v1366_v38, %v488_v52 }
 0x141   : > { %585 = vmatmul.f32.gmra.mxu2 %v1113_v53 }
 0x142   : > { %1114 = vtanh.f32 %v489_v54 }
 0x147   : > { %v491_v55 = vpop.f32.mrf.mxu1 }
 0x148   : > { %v1115_v56 = vpop.eup %1114  ;;  %v492_v57 = vadd.f32 %v1366_v38, %v491_v55 }
 0x149   : > { %588 = vmatmul.f32.gmra.mxu2 %v1115_v56 }
 0x14a   : > { %1116 = vtanh.f32 %v492_v57 }
 0x14f   : > { %v494_v58 = vpop.f32.mrf.mxu1 }
 0x150   : > { %v1117_v59 = vpop.eup %1116  ;;  %v495_v60 = vadd.f32 %v1366_v38, %v494_v58 }
 0x151   : > { %591 = vmatmul.f32.gmra.mxu2 %v1117_v59 }
 0x152   : > { %1118 = vtanh.f32 %v495_v60 }
 0x157   : > { %v497_v61 = vpop.f32.mrf.mxu1 }
 0x158   : > { %v1119_v62 = vpop.eup %1118  ;;  %v498_v63 = vadd.f32 %v1366_v38, %v497_v61 }
 0x159   : > { %594 = vmatmul.f32.gmra.mxu2 %v1119_v62 }
 0x15a   : > { %1120 = vtanh.f32 %v498_v63 }
 0x15f   : > { %v500_v0 = vpop.f32.mrf.mxu1 }
 0x160   : > { %v1121_v1 = vpop.eup %1120  ;;  %v501_v2 = vadd.f32 %v1366_v38, %v500_v0 }
 0x161   : > { %597 = vmatmul.f32.gmra.mxu2 %v1121_v1 }
 0x162   : > { %1122 = vtanh.f32 %v501_v2 }
 0x167   : > { %v503_v3 = vpop.f32.mrf.mxu1 }
 0x168   : > { %v1123_v4 = vpop.eup %1122  ;;  %v504_v5 = vadd.f32 %v1366_v38, %v503_v3 }
 0x169   : > { %600 = vmatmul.f32.gmra.mxu2 %v1123_v4 }
 0x16a   : > { %1124 = vtanh.f32 %v504_v5 }
 0x16f   : > { %v506_v6 = vpop.f32.mrf.mxu1 }
 0x170   : > { %v1125_v7 = vpop.eup %1124  ;;  %v507_v8 = vadd.f32 %v1366_v38, %v506_v6 }
 0x171   : > { %603 = vmatmul.f32.gmra.mxu2 %v1125_v7 }
 0x172   : > { %1126 = vtanh.f32 %v507_v8 }
 0x178   : > { %v1127_v9 = vpop.eup %1126 }
 0x179   : > { %606 = vmatmul.f32.gmra.mxu2 %v1127_v9 }
 0x17d   : > { %v509_v10 = vpop.f32.mrf.mxu3 }
 0x17e   : > { %v510_v11 = vadd.f32 %v1366_v38, %v509_v10 }
 0x180   : > { %1128 = vtanh.f32 %v510_v11 }
 0x185   : > { %v512_v12 = vpop.f32.mrf.mxu3 }
 0x186   : > { %v1129_v13 = vpop.eup %1128  ;;  %v513_v14 = vadd.f32 %v1366_v38, %v512_v12 }
 0x187   : > { %609 = vmatmul.f32.vlgmr.msrb.gmra.mxu3 %v1129_v13 }
 0x188   : > { %1130 = vtanh.f32 %v513_v14 }
 0x18d   : > { %v515_v15 = vpop.f32.mrf.mxu3 }
 0x18e   : > { %v1131_v16 = vpop.eup %1130  ;;  %v516_v17 = vadd.f32 %v1366_v38, %v515_v15 }
 0x18f   : > { %612 = vmatmul.f32.gmra.mxu3 %v1131_v16 }
 0x190   : > { %1132 = vtanh.f32 %v516_v17 }
 0x195   : > { %v518_v18 = vpop.f32.mrf.mxu3 }
 0x196   : > { %v1133_v19 = vpop.eup %1132  ;;  %v519_v20 = vadd.f32 %v1366_v38, %v518_v18 }
 0x197   : > { %615 = vmatmul.f32.gmra.mxu3 %v1133_v19 }
 0x198   : > { %1134 = vtanh.f32 %v519_v20 }
 0x19e   : > { %v1135_v22 = vpop.eup %1134 }
 0x19f   : > { %618 = vmatmul.f32.gmra.mxu3 %v1135_v22 }
 0x1a4   : > { %v574_v25 = vpop.f32.mrf.mxu2 }
 0x1a5   : > { %v575_v26 = vadd.f32 %v1389_v24, %v574_v25 }
 0x1a7   : > { %v625_v27 = vsel %vm624_vm1, %v575_v26, -inf }
 0x1a8   : > { %641 = vmax.xlane.f32.xlu0 %v625_v27 }
 0x1ac   : > { %v577_v28 = vpop.f32.mrf.mxu2 }
 0x1ad   : > { %v578_v29 = vadd.f32 %v1389_v24, %v577_v28 }
 0x1af   : > { %v1398_v30 = vsel %vm624_vm1, %v578_v29, -inf }
 0x1b0   : > { %643 = vmax.xlane.f32.xlu0 %v1398_v30 }
 0x1b4   : > { %v580_v31 = vpop.f32.mrf.mxu2 }
 0x1b5   : > { %v581_v32 = vadd.f32 %v1389_v24, %v580_v31 }
 0x1b7   : > { %v1404_v33 = vsel %vm624_vm1, %v581_v32, -inf }
 0x1b8   : > { %645 = vmax.xlane.f32.xlu1 %v1404_v33 }
 0x1bc   : > { %v583_v34 = vpop.f32.mrf.mxu2 }
 0x1bd   : > { %v584_v35 = vadd.f32 %v1389_v24, %v583_v34 }
 0x1bf   : > { %v1410_v37 = vsel %vm624_vm1, %v584_v35, -inf }
 0x1c0   : > { %647 = vmax.xlane.f32.xlu1 %v1410_v37 }
 0x1c4   : > { %v586_v38 = vpop.f32.mrf.mxu2 }
 0x1c5   : > { %v587_v39 = vadd.f32 %v1389_v24, %v586_v38 }
 0x1c7   : > { %v1416_v40 = vsel %vm624_vm1, %v587_v39, -inf }
 0x1c8   : > { %649 = vmax.xlane.f32.xlu2 %v1416_v40 }
 0x1cc   : > { %v589_v41 = vpop.f32.mrf.mxu2 }
 0x1cd   : > { %v590_v42 = vadd.f32 %v1389_v24, %v589_v41 }
 0x1cf   : > { %v1422_v43 = vsel %vm624_vm1, %v590_v42, -inf }
 0x1d0   : > { %651 = vmax.xlane.f32.xlu2 %v1422_v43 }
 0x1d4   : > { %v592_v36 = vpop.f32.mrf.mxu2 }
 0x1d5   : > { %v593_v44 = vadd.f32 %v1389_v24, %v592_v36 }
 0x1d7   : > { %v1428_v45 = vsel %vm624_vm1, %v593_v44, -inf }
 0x1d8   : > { %653 = vmax.xlane.f32.xlu0 %v1428_v45 }
 0x1dc   : > { %v595_v46 = vpop.f32.mrf.mxu2 }
 0x1dd   : > { %v596_v47 = vadd.f32 %v1389_v24, %v595_v46 }
 0x1df   : > { %v1434_v48 = vsel %vm624_vm1, %v596_v47, -inf }
 0x1e0   : > { %655 = vmax.xlane.f32.xlu1 %v1434_v48 }
 0x1e4   : > { %v598_v49 = vpop.f32.mrf.mxu2 }
 0x1e5   : > { %v599_v50 = vadd.f32 %v1389_v24, %v598_v49 }
 0x1e7   : > { %v1440_v51 = vsel %vm624_vm1, %v599_v50, -inf }
 0x1e8   : > { %657 = vmax.xlane.f32.xlu2 %v1440_v51 }
 0x1ec   : > { %v601_v52 = vpop.f32.mrf.mxu2 }
 0x1ed   : > { %v602_v53 = vadd.f32 %v1389_v24, %v601_v52 }
 0x1ef   : > { %v1446_v54 = vsel %vm624_vm1, %v602_v53, -inf }
 0x1f0   : > { %659 = vmax.xlane.f32.xlu0 %v1446_v54 }
 0x1f4   : > { %v604_v55 = vpop.f32.mrf.mxu2 }
 0x1f5   : > { %v605_v56 = vadd.f32 %v1389_v24, %v604_v55 }
 0x1f7   : > { %v1452_v57 = vsel %vm624_vm1, %v605_v56, -inf }
 0x1f8   : > { %661 = vmax.xlane.f32.xlu1 %v1452_v57 }
 0x1fc   : > { %v607_v58 = vpop.f32.mrf.mxu2 }
 0x1fd   : > { %v608_v59 = vadd.f32 %v1389_v24, %v607_v58 }
 0x1ff   : > { %v1458_v60 = vsel %vm624_vm1, %v608_v59, -inf }
 0x200   : > { %663 = vmax.xlane.f32.xlu2 %v1458_v60 }
 0x20a   : > { %v610_v61 = vpop.f32.mrf.mxu3 }
 0x20b   : > { %v611_v62 = vadd.f32 %v1389_v24, %v610_v61 }
 0x20d   : > { %v1464_v63 = vsel %vm624_vm1, %v611_v62, -inf }
 0x20e   : > { %665 = vmax.xlane.f32.xlu0 %v1464_v63 }
 0x212   : > { %v613_v0 = vpop.f32.mrf.mxu3 }
 0x213   : > { %v614_v1 = vadd.f32 %v1389_v24, %v613_v0 }
 0x215   : > { %v1470_v2 = vsel %vm624_vm1, %v614_v1, -inf }
 0x216   : > { %667 = vmax.xlane.f32.xlu1 %v1470_v2 }
 0x21a   : > { %v616_v3 = vpop.f32.mrf.mxu3 }
 0x21b   : > { %v617_v4 = vadd.f32 %v1389_v24, %v616_v3  ;;  %v642_v5 = vpop.xlane.xlu0 %641 }
 0x21c   : > { %vm673_vm2 = vcmp.eq.f32.partialorder %v625_v27, %v642_v5 }
 0x21d   : > { %v1475_v6 = vsel %vm673_vm2, %v1384_v23, 128  ;;  %v1479_v7 = vsel %vm624_vm1, %v617_v4, -inf }
 0x21e   : > { %669 = vmax.xlane.f32.xlu2 %v1479_v7  ;;  %v706_v8 = vshra.s32 %v1475_v6, 16 }
 0x220   : > { %v1483_v9 = vcvt.s32.f32 %v706_v8 }
 0x222   : > { %v619_v10 = vpop.f32.mrf.mxu3  ;;  %709 = vmin.xlane.f32.xlu1 %v1483_v9 }
 0x223   : > { %v620_v11 = vadd.f32 %v1389_v24, %v619_v10  ;;  %v644_v12 = vpop.xlane.xlu0 %643 }
 0x224   : > { %vm674_vm3 = vcmp.eq.f32.partialorder %v1398_v30, %v644_v12 }
 0x225   : > { %v1489_v13 = vsel %vm674_vm3, %v1384_v23, 128  ;;  %v1493_v14 = vsel %vm624_vm1, %v620_v11, -inf }
 0x226   : > { %671 = vmax.xlane.f32.xlu0 %v1493_v14  ;;  %v720_v15 = vshra.s32 %v1489_v13, 16 }
 0x228   : > { %v1498_v17 = vcvt.s32.f32 %v720_v15  ;;  %v719_v15 = vand.u32 65535, %v1489_v13 }
 0x22b   : > { %v646_v16 = vpop.xlane.xlu1 %645 }
 0x22c   : > { %vm675_vm4 = vcmp.eq.f32.partialorder %v1404_v33, %v646_v16 }
 0x22d   : > { %v1501_v18 = vsel %vm675_vm4, %v1384_v23, 128 }
 0x22e   : > { %723 = vmin.xlane.f32.xlu0 %v1498_v17  ;;  %v734_v19 = vshra.s32 %v1501_v18, 16 }
 0x230   : > { %v1505_v20 = vcvt.s32.f32 %v734_v19 }
 0x232   : > { %737 = vmin.xlane.f32.xlu2 %v1505_v20 }
 0x233   : > { %v648_v21 = vpop.xlane.xlu1 %647 }
 0x234   : > { %vm676_vm5 = vcmp.eq.f32.partialorder %v1410_v37, %v648_v21  ;;  %v733_v21 = vand.u32 65535, %v1501_v18 }
 0x235   : > { %v1510_v22 = vsel %vm676_vm5, %v1384_v23, 128 }
 0x236   : > { %v748_v24 = vshra.s32 %v1510_v22, 16  ;;  %v747_v13 = vand.u32 65535, %v1510_v22 }
 0x238   : > { %v1513_v25 = vcvt.s32.f32 %v748_v24 }
 0x23a   : > { %751 = vmin.xlane.f32.xlu0 %v1513_v25 }
 0x23b   : > { %v650_v26 = vpop.xlane.xlu2 %649 }
 0x23c   : > { %vm677_vm6 = vcmp.eq.f32.partialorder %v1416_v40, %v650_v26  ;;  %v735_v26 = vcvt.s32.f32 %v733_v21 }
 0x23d   : > { %v1518_v27 = vsel %vm677_vm6, %v1384_v23, 128 }
 0x23e   : > { %v762_v28 = vshra.s32 %v1518_v27, 16  ;;  %v761_v18 = vand.u32 65535, %v1518_v27 }
 0x240   : > { %v1521_v29 = vcvt.s32.f32 %v762_v28 }
 0x242   : > { %765 = vmin.xlane.f32.xlu1 %v1521_v29 }
 0x243   : > { %v652_v30 = vpop.xlane.xlu2 %651 }
 0x244   : > { %vm678_vm7 = vcmp.eq.f32.partialorder %v1422_v43, %v652_v30 }
 0x245   : > { %v1526_v31 = vsel %vm678_vm7, %v1384_v23, 128 }
 0x246   : > { %v776_v32 = vshra.s32 %v1526_v31, 16  ;;  %v775_v22 = vand.u32 65535, %v1526_v31 }
 0x248   : > { %v1529_v33 = vcvt.s32.f32 %v776_v32  ;;  %v749_v32 = vcvt.s32.f32 %v747_v13 }
 0x24a   : > { %779 = vmin.xlane.f32.xlu2 %v1529_v33 }
 0x24b   : > { %v654_v34 = vpop.xlane.xlu0 %653 }
 0x24c   : > { %vm679_vm8 = vcmp.eq.f32.partialorder %v1428_v45, %v654_v34 }
 0x24d   : > { %v1534_v35 = vsel %vm679_vm8, %v1384_v23, 128 }
 0x24e   : > { %v790_v37 = vshra.s32 %v1534_v35, 16  ;;  %v789_v27 = vand.u32 65535, %v1534_v35 }
 0x250   : > { %v1537_v38 = vcvt.s32.f32 %v790_v37  ;;  %v763_v37 = vcvt.s32.f32 %v761_v18 }
 0x252   : > { %793 = vmin.xlane.f32.xlu0 %v1537_v38 }
 0x253   : > { %v656_v39 = vpop.xlane.xlu1 %655 }
 0x254   : > { %vm680_vm9 = vcmp.eq.f32.partialorder %v1434_v48, %v656_v39 }
 0x255   : > { %v1542_v40 = vsel %vm680_vm9, %v1384_v23, 128 }
 0x256   : > { %v804_v41 = vshra.s32 %v1542_v40, 16  ;;  %v803_v31 = vand.u32 65535, %v1542_v40 }
 0x258   : > { %v1545_v42 = vcvt.s32.f32 %v804_v41  ;;  %v777_v41 = vcvt.s32.f32 %v775_v22 }
 0x25a   : > { %807 = vmin.xlane.f32.xlu1 %v1545_v42 }
 0x25b   : > { %v658_v43 = vpop.xlane.xlu2 %657 }
 0x25c   : > { %vm681_vm10 = vcmp.eq.f32.partialorder %v1440_v51, %v658_v43 }
 0x25d   : > { %v1550_v36 = vsel %vm681_vm10, %v1384_v23, 128 }
 0x25e   : > { %v818_v44 = vshra.s32 %v1550_v36, 16  ;;  %v817_v35 = vand.u32 65535, %v1550_v36 }
 0x260   : > { %v1553_v45 = vcvt.s32.f32 %v818_v44  ;;  %v791_v44 = vcvt.s32.f32 %v789_v27 }
 0x262   : > { %821 = vmin.xlane.f32.xlu2 %v1553_v45 }
 0x263   : > { %v660_v46 = vpop.xlane.xlu0 %659 }
 0x264   : > { %vm682_vm11 = vcmp.eq.f32.partialorder %v1446_v54, %v660_v46 }
 0x265   : > { %v1558_v47 = vsel %vm682_vm11, %v1384_v23, 128 }
 0x266   : > { %v832_v48 = vshra.s32 %v1558_v47, 16  ;;  %v831_v40 = vand.u32 65535, %v1558_v47 }
 0x268   : > { %v1561_v49 = vcvt.s32.f32 %v832_v48  ;;  %v805_v48 = vcvt.s32.f32 %v803_v31 }
 0x26a   : > { %835 = vmin.xlane.f32.xlu0 %v1561_v49 }
 0x26b   : > { %v662_v50 = vpop.xlane.xlu1 %661 }
 0x26c   : > { %vm683_vm12 = vcmp.eq.f32.partialorder %v1452_v57, %v662_v50 }
 0x26d   : > { %v1566_v51 = vsel %vm683_vm12, %v1384_v23, 128 }
 0x26e   : > { %v846_v52 = vshra.s32 %v1566_v51, 16  ;;  %v845_v36 = vand.u32 65535, %v1566_v51 }
 0x270   : > { %v1569_v53 = vcvt.s32.f32 %v846_v52  ;;  %v819_v52 = vcvt.s32.f32 %v817_v35 }
 0x272   : > { %849 = vmin.xlane.f32.xlu1 %v1569_v53 }
 0x273   : > { %v664_v54 = vpop.xlane.xlu2 %663 }
 0x274   : > { %vm684_vm13 = vcmp.eq.f32.partialorder %v1458_v60, %v664_v54 }
 0x275   : > { %v1574_v55 = vsel %vm684_vm13, %v1384_v23, 128 }
 0x276   : > { %v860_v56 = vshra.s32 %v1574_v55, 16  ;;  %v859_v47 = vand.u32 65535, %v1574_v55 }
 0x278   : > { %v1577_v58 = vcvt.s32.f32 %v860_v56  ;;  %v833_v56 = vcvt.s32.f32 %v831_v40 }
 0x27a   : > { %863 = vmin.xlane.f32.xlu2 %v1577_v58 }
 0x281   : > { %v666_v57 = vpop.xlane.xlu0 %665 }
 0x282   : > { %vm685_vm14 = vcmp.eq.f32.partialorder %v1464_v63, %v666_v57  ;;  %v705_v63 = vand.u32 65535, %v1475_v6 }
 0x283   : > { %v1582_v59 = vsel %vm685_vm14, %v1384_v23, 128 }
 0x284   : > { %v874_v61 = vshra.s32 %v1582_v59, 16  ;;  %v707_v8 = vcvt.s32.f32 %v705_v63  ;;  %v873_v51 = vand.u32 65535, %v1582_v59 }
 0x286   : > { %v1585_v62 = vcvt.s32.f32 %v874_v61  ;;  %v847_v61 = vcvt.s32.f32 %v845_v36 }
 0x288   : > { %877 = vmin.xlane.f32.xlu0 %v1585_v62 }
 0x289   : > { %v668_v60 = vpop.xlane.xlu1 %667 }
 0x28a   : > { %vm686_vm15 = vcmp.eq.f32.partialorder %v1470_v2, %v668_v60 }
 0x28b   : > { %v1590_v0 = vsel %vm686_vm15, %v1384_v23, 128 }
 0x28c   : > { %v888_v1 = vshra.s32 %v1590_v0, 16  ;;  %v887_v55 = vand.u32 65535, %v1590_v0 }
 0x28e   : > { %v1593_v3 = vcvt.s32.f32 %v888_v1  ;;  %v861_v1 = vcvt.s32.f32 %v859_v47 }
 0x290   : > { %891 = vmin.xlane.f32.xlu1 %v1593_v3 }
 0x291   : > { %v670_v4 = vpop.xlane.xlu2 %669 }
 0x292   : > { %vm687_vm0 = vcmp.eq.f32.partialorder %v1479_v7, %v670_v4  ;;  %v875_v4 = vcvt.s32.f32 %v873_v51 }
 0x293   : > { %v1603_v2 = vsel %vm687_vm0, %v1384_v23, 128  ;;  %vm929_vm0 = vcmask 7168  }
 0x294   : > { %v902_v12 = vshra.s32 %v1603_v2, 16  ;;  %v901_v0 = vand.u32 65535, %v1603_v2 }
 0x295   : > { %v1598_v5 = vpop.xlane.xlu1 %709 }
 0x296   : > { %vm711_vm1 = vcmp.eq.f32.partialorder %v1483_v9, %v1598_v5  ;;  %v1612_v16 = vcvt.s32.f32 %v902_v12  ;;  %v716_v59 = vcvt.f32.s32 %v1598_v5 }
 0x297   : > { %v712_v10 = vsel %vm711_vm1, %v707_v8, inf }
 0x298   : > { %713 = vmin.xlane.f32.xlu2 %v712_v10  ;;  %v889_v10 = vcvt.s32.f32 %v887_v55  ;;  %v717_v12 = vshll.u32 %v716_v59, 16 }
 0x299   : > { %v672_v11 = vpop.xlane.xlu0 %671 }
 0x29a   : > { %vm688_vm2 = vcmp.eq.f32.partialorder %v1493_v14, %v672_v11  ;;  %v721_v14 = vcvt.s32.f32 %v719_v15 }
 0x29b   : > { %v1608_v6 = vsel %vm688_vm2, %v1384_v23, 128 }
 0x29c   : > { %v916_v7 = vshra.s32 %v1608_v6, 16 }
 0x29e   : > { %v1614_v9 = vcvt.s32.f32 %v916_v7 }
 0x2a0   : > { %905 = vmin.xlane.f32.xlu2 %v1612_v16  ;;  %919 = vmin.xlane.f32.xlu0 %v1614_v9 }
 0x2a1   : > { %v1618_v19 = vpop.xlane.xlu0 %723 }
 0x2a2   : > { %vm725_vm3 = vcmp.eq.f32.partialorder %v1498_v17, %v1618_v19  ;;  %v730_v21 = vcvt.f32.s32 %v1618_v19 }
 0x2a3   : > { %v726_v23 = vsel %vm725_vm3, %v721_v14, inf  ;;  %v903_v14 = vcvt.s32.f32 %v901_v0 }
 0x2a4   : > { %727 = vmin.xlane.f32.xlu1 %v726_v23 }
 0x2a5   : > { %v1623_v24 = vpop.xlane.xlu2 %737 }
 0x2a6   : > { %vm739_vm4 = vcmp.eq.f32.partialorder %v1505_v20, %v1623_v24 }
 0x2a7   : > { %v740_v28 = vsel %vm739_vm4, %v735_v26, inf  ;;  %v731_v26 = vshll.u32 %v730_v21, 16 }
 0x2ac   : > { %741 = vmin.xlane.f32.xlu1 %v740_v28 }
 0x2ad   : > { %v1628_v30 = vpop.xlane.xlu0 %751 }
 0x2ae   : > { %vm753_vm5 = vcmp.eq.f32.partialorder %v1513_v25, %v1628_v30 }
 0x2af   : > { %v754_v17 = vsel %vm753_vm5, %v749_v32, inf }
 0x2b0   : > { %755 = vmin.xlane.f32.xlu2 %v754_v17  ;;  %v744_v17 = vcvt.f32.s32 %v1623_v24 }
 0x2b2   : > { %v745_v18 = vshll.u32 %v744_v17, 16 }
 0x2b5   : > { %v1633_v34 = vpop.xlane.xlu1 %765 }
 0x2b6   : > { %vm767_vm6 = vcmp.eq.f32.partialorder %v1521_v29, %v1633_v34  ;;  %v772_v27 = vcvt.f32.s32 %v1633_v34 }
 0x2b7   : > { %v768_v20 = vsel %vm767_vm6, %v763_v37, inf }
 0x2b8   : > { %769 = vmin.xlane.f32.xlu0 %v768_v20 }
 0x2bd   : > { %v1638_v39 = vpop.xlane.xlu2 %779 }
 0x2be   : > { %vm781_vm7 = vcmp.eq.f32.partialorder %v1529_v33, %v1638_v39 }
 0x2bf   : > { %v782_v25 = vsel %vm781_vm7, %v777_v41, inf }
 0x2c0   : > { %783 = vmin.xlane.f32.xlu1 %v782_v25 }
 0x2c5   : > { %v1643_v43 = vpop.xlane.xlu0 %793 }
 0x2c6   : > { %vm795_vm8 = vcmp.eq.f32.partialorder %v1537_v38, %v1643_v43 }
 0x2c7   : > { %v796_v29 = vsel %vm795_vm8, %v791_v44, inf  ;;  %v773_v44 = vshll.u32 %v772_v27, 16 }
 0x2c8   : > { %797 = vmin.xlane.f32.xlu2 %v796_v29 }
 0x2cd   : > { %v1648_v46 = vpop.xlane.xlu1 %807 }
 0x2ce   : > { %vm809_vm9 = vcmp.eq.f32.partialorder %v1545_v42, %v1648_v46  ;;  %v814_v36 = vcvt.f32.s32 %v1648_v46 }
 0x2cf   : > { %v810_v33 = vsel %vm809_vm9, %v805_v48, inf }
 0x2d0   : > { %811 = vmin.xlane.f32.xlu0 %v810_v33 }
 0x2d5   : > { %v1653_v50 = vpop.xlane.xlu2 %821 }
 0x2d6   : > { %vm823_vm10 = vcmp.eq.f32.partialorder %v1553_v45, %v1653_v50 }
 0x2d7   : > { %v824_v38 = vsel %vm823_vm10, %v819_v52, inf }
 0x2d8   : > { %825 = vmin.xlane.f32.xlu1 %v824_v38  ;;  %v800_v38 = vcvt.f32.s32 %v1643_v43 }
 0x2da   : > { %v801_v40 = vshll.u32 %v800_v38, 16 }
 0x2dd   : > { %v1658_v54 = vpop.xlane.xlu0 %835 }
 0x2de   : > { %vm837_vm11 = vcmp.eq.f32.partialorder %v1561_v49, %v1658_v54 }
 0x2df   : > { %v838_v42 = vsel %vm837_vm11, %v833_v56, inf }
 0x2e0   : > { %839 = vmin.xlane.f32.xlu2 %v838_v42 }
 0x2e5   : > { %v1663_v57 = vpop.xlane.xlu1 %849 }
 0x2e6   : > { %vm851_vm12 = vcmp.eq.f32.partialorder %v1569_v53, %v1663_v57  ;;  %v856_v59 = vcvt.f32.s32 %v1663_v57 }
 0x2e7   : > { %v852_v45 = vsel %vm851_vm12, %v847_v61, inf  ;;  %v815_v61 = vshll.u32 %v814_v36, 16 }
 0x2e8   : > { %853 = vmin.xlane.f32.xlu0 %v852_v45 }
 0x2ed   : > { %v1668_v60 = vpop.xlane.xlu2 %863 }
 0x2ee   : > { %vm865_vm13 = vcmp.eq.f32.partialorder %v1577_v58, %v1668_v60 }
 0x2ef   : > { %v866_v49 = vsel %vm865_vm13, %v861_v1, inf  ;;  %v828_v1 = vcvt.f32.s32 %v1653_v50 }
 0x2f0   : > { %867 = vmin.xlane.f32.xlu1 %v866_v49 }
 0x2f1   : > { %v829_v49 = vshll.u32 %v828_v1, 16 }
 0x2fb   : > { %v1673_v63 = vpop.xlane.xlu0 %877 }
 0x2fc   : > { %vm879_vm14 = vcmp.eq.f32.partialorder %v1585_v62, %v1673_v63  ;;  %v884_v57 = vcvt.f32.s32 %v1673_v63 }
 0x2fd   : > { %v880_v53 = vsel %vm879_vm14, %v875_v4, inf }
 0x2fe   : > { %881 = vmin.xlane.f32.xlu2 %v880_v53  ;;  %v842_v53 = vcvt.f32.s32 %v1658_v54  ;;  %v885_v21 = vshll.u32 %v884_v57, 16 }
 0x300   : > { %v843_v55 = vshll.u32 %v842_v53, 16 }
 0x303   : > { %v1678_v8 = vpop.xlane.xlu1 %891 }
 0x304   : > { %vm893_vm15 = vcmp.eq.f32.partialorder %v1593_v3, %v1678_v8  ;;  %v915_v3 = vand.u32 65535, %v1608_v6 }
 0x305   : > { %v894_v58 = vsel %vm893_vm15, %v889_v10, inf }
 0x306   : > { %895 = vmin.xlane.f32.xlu0 %v894_v58  ;;  %v917_v23 = vcvt.s32.f32 %v915_v3 }
 0x30b   : > { %v714_v11 = vpop.xlane.xlu2 %713 }
 0x30c   : > { %v715_v7 = vcvt.f32.s32 %v714_v11  ;;  %v857_v11 = vshll.u32 %v856_v59, 16 }
 0x30e   : > { %v718_v62 = vadd.s32 %v717_v12, %v715_v7 }
 0x310   : > { %930 = vst.msk [vmem:[%s1688_s8] sm:$0xff] %vm929_vm0, %v718_v62  ;;  %v870_v62 = vcvt.f32.s32 %v1668_v60 }
 0x312   : > { %v871_v0 = vshll.u32 %v870_v62, 16 }
 0x313   : > { %v1694_v15 = vpop.xlane.xlu2 %905  ;;  %v1696_v5 = vpop.xlane.xlu0 %919 }
 0x314   : > { %vm907_vm1 = vcmp.eq.f32.partialorder %v1612_v16, %v1694_v15  ;;  %vm921_vm2 = vcmp.eq.f32.partialorder %v1614_v9, %v1696_v5  ;;  %v758_v16 = vcvt.f32.s32 %v1628_v30  ;;  %v786_v30 = vcvt.f32.s32 %v1638_v39 }
 0x315   : > { %v908_v2 = vsel %vm907_vm1, %v903_v14, inf  ;;  %v922_v13 = vsel %vm921_vm2, %v917_v23, inf  ;;  %v912_v17 = vcvt.f32.s32 %v1694_v15  ;;  %v926_v63 = vcvt.f32.s32 %v1696_v5 }
 0x316   : > { %909 = vmin.xlane.f32.xlu1 %v908_v2  ;;  %923 = vmin.xlane.f32.xlu2 %v922_v13  ;;  %v759_v22 = vshll.u32 %v758_v16, 16  ;;  %v787_v33 = vshll.u32 %v786_v30, 16 }
 0x317   : > { %v728_v6 = vpop.xlane.xlu1 %727  ;;  %v913_v16 = vshll.u32 %v912_v17, 16 }
 0x318   : > { %v729_v28 = vcvt.f32.s32 %v728_v6  ;;  %v898_v6 = vcvt.f32.s32 %v1678_v8 }
 0x31a   : > { %v732_v32 = vadd.s32 %v731_v26, %v729_v28  ;;  %v899_v26 = vshll.u32 %v898_v6, 16 }
 0x31c   : > { %931 = vst.msk [vmem:[%s1688_s8 + $0x8] sm:$0xff] %vm929_vm0, %v732_v32 }
 0x31f   : > { %v742_v19 = vpop.xlane.xlu1 %741 }
 0x320   : > { %v743_v9 = vcvt.f32.s32 %v742_v19 }
 0x322   : > { %v746_v37 = vadd.s32 %v745_v18, %v743_v9  ;;  %v927_v9 = vshll.u32 %v926_v63, 16 }
 0x323   : > { %v756_v20 = vpop.xlane.xlu2 %755 }
 0x324   : > { %932 = vst.msk [vmem:[%s1688_s8 + $0x10] sm:$0xff] %vm929_vm0, %v746_v37  ;;  %v757_v41 = vcvt.f32.s32 %v756_v20 }
 0x326   : > { %v760_v25 = vadd.s32 %v759_v22, %v757_v41 }
 0x328   : > { %933 = vst.msk [vmem:[%s1688_s8 + $0x18] sm:$0xff] %vm929_vm0, %v760_v25 }
 0x32b   : > { %v770_v24 = vpop.xlane.xlu0 %769 }
 0x32c   : > { %v771_v29 = vcvt.f32.s32 %v770_v24 }
 0x32e   : > { %v774_v31 = vadd.s32 %v773_v44, %v771_v29 }
 0x330   : > { %934 = vst.msk [vmem:[%s1688_s8 + $0x20] sm:$0xff] %vm929_vm0, %v774_v31 }
 0x333   : > { %v784_v48 = vpop.xlane.xlu1 %783 }
 0x334   : > { %v785_v35 = vcvt.f32.s32 %v784_v48 }
 0x336   : > { %v788_v52 = vadd.s32 %v787_v33, %v785_v35 }
 0x338   : > { %935 = vst.msk [vmem:[%s1688_s8 + $0x28] sm:$0xff] %vm929_vm0, %v788_v52 }
 0x33b   : > { %v798_v34 = vpop.xlane.xlu2 %797 }
 0x33c   : > { %v799_v56 = vcvt.f32.s32 %v798_v34 }
 0x33e   : > { %v802_v42 = vadd.s32 %v801_v40, %v799_v56 }
 0x340   : > { %936 = vst.msk [vmem:[%s1688_s8 + $0x30] sm:$0xff] %vm929_vm0, %v802_v42 }
 0x343   : > { %v812_v39 = vpop.xlane.xlu0 %811 }
 0x344   : > { %v813_v45 = vcvt.f32.s32 %v812_v39 }
 0x346   : > { %v816_v47 = vadd.s32 %v815_v61, %v813_v45 }
 0x348   : > { %937 = vst.msk [vmem:[%s1688_s8 + $0x38] sm:$0xff] %vm929_vm0, %v816_v47 }
 0x34b   : > { %v826_v43 = vpop.xlane.xlu1 %825 }
 0x34c   : > { %v827_v51 = vcvt.f32.s32 %v826_v43 }
 0x34e   : > { %v830_v4 = vadd.s32 %v829_v49, %v827_v51 }
 0x350   : > { %938 = vst.msk [vmem:[%s1688_s8 + $0x40] sm:$0xff] %vm929_vm0, %v830_v4 }
 0x353   : > { %v840_v46 = vpop.xlane.xlu2 %839 }
 0x354   : > { %v841_v10 = vcvt.f32.s32 %v840_v46 }
 0x356   : > { %v844_v58 = vadd.s32 %v843_v55, %v841_v10 }
 0x358   : > { %939 = vst.msk [vmem:[%s1688_s8 + $0x48] sm:$0xff] %vm929_vm0, %v844_v58 }
 0x35b   : > { %v854_v50 = vpop.xlane.xlu0 %853 }
 0x35c   : > { %v855_v12 = vcvt.f32.s32 %v854_v50 }
 0x35e   : > { %v858_v7 = vadd.s32 %v857_v11, %v855_v12 }
 0x360   : > { %940 = vst.msk [vmem:[%s1688_s8 + $0x50] sm:$0xff] %vm929_vm0, %v858_v7 }
 0x363   : > { %v868_v54 = vpop.xlane.xlu1 %867 }
 0x364   : > { %v869_v3 = vcvt.f32.s32 %v868_v54 }
 0x366   : > { %v872_v14 = vadd.s32 %v871_v0, %v869_v3 }
 0x368   : > { %941 = vst.msk [vmem:[%s1688_s8 + $0x58] sm:$0xff] %vm929_vm0, %v872_v14 }
 0x371   : > { %v882_v23 = vpop.xlane.xlu2 %881 }
 0x372   : > { %v883_v2 = vcvt.f32.s32 %v882_v23 }
 0x374   : > { %v886_v13 = vadd.s32 %v885_v21, %v883_v2 }
 0x376   : > { %942 = vst.msk [vmem:[%s1688_s8 + $0x60] sm:$0xff] %vm929_vm0, %v886_v13 }
 0x379   : > { %v896_v60 = vpop.xlane.xlu0 %895 }
 0x37a   : > { %v897_v28 = vcvt.f32.s32 %v896_v60 }
 0x37c   : > { %v900_v32 = vadd.s32 %v899_v26, %v897_v28 }
 0x37e   : > { %943 = vst.msk [vmem:[%s1688_s8 + $0x68] sm:$0xff] %vm929_vm0, %v900_v32 }
 0x389   : > { %v910_v19 = vpop.xlane.xlu1 %909  ;;  %v924_v18 = vpop.xlane.xlu2 %923 }
 0x38a   : > { %v911_v37 = vcvt.f32.s32 %v910_v19  ;;  %v925_v8 = vcvt.f32.s32 %v924_v18 }
 0x38c   : > { %v914_v20 = vadd.s32 %v913_v16, %v911_v37  ;;  %v928_v22 = vadd.s32 %v927_v9, %v925_v8 }
 0x38e   : > { %944 = vst.msk [vmem:[%s1688_s8 + $0x70] sm:$0xff] %vm929_vm0, %v914_v20 }
 0x38f   : > { %945 = vst.msk [vmem:[%s1688_s8 + $0x78] sm:$0xff] %vm929_vm0, %v928_v22 }
 0x390 PF: > { %s17_s24 = sadd.s32 1, %s1142_s24  }
 0x391   : > { %p14_p4 = scmp.ge.s32.totalorder %s17_s24, 4  }
 0x393   :  { %16 = sbr.rel (!%p14_p4) target bundleno = 1 (0x1), region = 78 }

</bundles_post_ra>
